<compile_context>
chip_gen: v7x
topology: tpu7x:2x2x1
jax: 0.10.0
libtpu: 0.0.40
codegen_flags: <defaults>
</compile_context>

<pallas_src>
import functools

import jax
import jax.numpy as jnp
import numpy as np
from jax.experimental import pallas as pl
from jax.experimental.pallas import tpu as pltpu


# -----------------------------------------------------------------------------
# In-kernel helpers (operate on values, not refs)
# -----------------------------------------------------------------------------
def _group_norm(h, gamma, beta, groups, eps):
    """GroupNorm over (C//groups, HW) per group. h: (C, HW); gamma/beta: (C, 1)."""
    C, HW = h.shape
    cg = C // groups
    inv_n = 1.0 / float(cg * HW)
    pieces = []
    for g in range(groups):                       # static & tiny (groups = C//8)
        hg = h[g * cg:(g + 1) * cg, :]                                  # (cg, HW)
        s = jnp.sum(jnp.sum(hg, axis=1, keepdims=True), axis=0, keepdims=True)
        mean = s * inv_n                                                # (1, 1)
        cent = hg - mean
        s2 = jnp.sum(jnp.sum(cent * cent, axis=1, keepdims=True),
                     axis=0, keepdims=True)
        inv_std = jax.lax.rsqrt(s2 * inv_n + eps)                       # (1, 1)
        pieces.append(cent * inv_std)
    hn = jnp.concatenate(pieces, axis=0)                                # (C, HW)
    return hn * gamma + beta


def _leaky_relu(h, neg_slope):
    return jnp.where(h >= 0, h, neg_slope * h)


# -----------------------------------------------------------------------------
# Fused residual-map kernel: one grid step = one sample, layout (C, H*W)
# -----------------------------------------------------------------------------
def _res_map_kernel(x_ref, w1_ref, w2_ref, w3_ref,
                    g1_ref, b1_ref, g2_ref, b2_ref, g3_ref, b3_ref,
                    o_ref, *, H, W, gb, go, eps, neg_slope):
    HW = H * W
    x = x_ref[...].astype(jnp.float32)                                  # (Cin, HW)

    # ---- Conv1x1 (per-pixel matmul) + GN + LeakyReLU -------------------------
    h = jnp.dot(w1_ref[...], x, preferred_element_type=jnp.float32)     # (Cb, HW)
    h = _leaky_relu(_group_norm(h, g1_ref[...], b1_ref[...], gb, eps), neg_slope)

    # ---- Conv3x3 (padding=1) as a single im2col matmul -----------------------
    Cb = h.shape[0]
    col = jax.lax.broadcasted_iota(jnp.int32, (Cb, HW), 1) % W          # x coord
    patches = []
    for dy in (-1, 0, 1):
        for dx in (-1, 0, 1):
            d = dy * W + dx        # flat pixel offset read by this tap
            if d > 0:              # read pixel p+d; zero-fill the tail
                sh = jnp.concatenate(
                    [h[:, d:], jnp.zeros((Cb, d), h.dtype)], axis=1)
            elif d < 0:            # read pixel p+d; zero-fill the head
                sh = jnp.concatenate(
                    [jnp.zeros((Cb, -d), h.dtype), h[:, :HW + d]], axis=1)
            else:
                sh = h
            # Mask columns that would wrap across the W (row) boundary.
            if dx == -1:
                sh = jnp.where(col >= 1, sh, 0.0)
            elif dx == 1:
                sh = jnp.where(col <= W - 2, sh, 0.0)
            patches.append(sh)
    patch = jnp.concatenate(patches, axis=0)                            # (9*Cb, HW)
    h = jnp.dot(w2_ref[...], patch, preferred_element_type=jnp.float32)  # (Cb, HW)
    h = _leaky_relu(_group_norm(h, g2_ref[...], b2_ref[...], gb, eps), neg_slope)

    # ---- Conv1x1 + GN (no activation) ----------------------------------------
    h = jnp.dot(w3_ref[...], h, preferred_element_type=jnp.float32)     # (Cout, HW)
    h = _group_norm(h, g3_ref[...], b3_ref[...], go, eps)

    o_ref[...] = h.astype(o_ref.dtype)


# -----------------------------------------------------------------------------
# Wrapper: NCHW in, NCHW out (no transposes -- only free metadata reshapes)
# -----------------------------------------------------------------------------
def res_map_2d(x_nchw, params, gb, go, *, eps=1e-5, neg_slope=0.2):
    N, Cin, H, W = x_nchw.shape
    HW = H * W
    Cb = params["w1"].shape[0]
    Cout = params["w3"].shape[0]

    xf = x_nchw.reshape(N, Cin, HW)                       # metadata-only
    # im2col weight: OIHW (Cb, Cb, 3, 3) -> (Cb, 9*Cb), column = (ky*3+kx)*Cb + ci
    w2m = jnp.transpose(params["w2"], (0, 2, 3, 1)).reshape(Cb, 9 * Cb)
    colv = lambda v: v.reshape(-1, 1)                     # per-channel affine -> (C,1)

    def _rep(shape):                                       # replicated (weight) spec
        zeros = (0,) * len(shape)
        return pl.BlockSpec(shape, lambda b: zeros)

    kern = functools.partial(_res_map_kernel, H=H, W=W, gb=gb, go=go,
                             eps=eps, neg_slope=neg_slope)
    out = pl.pallas_call(
        kern,
        out_shape=jax.ShapeDtypeStruct((N, Cout, HW), x_nchw.dtype),
        grid=(N,),
        in_specs=[
            pl.BlockSpec((None, Cin, HW), lambda b: (b, 0, 0)),   # x, one sample
            _rep((Cb, Cin)),                                      # w1
            _rep((Cb, 9 * Cb)),                                   # w2 (im2col)
            _rep((Cout, Cb)),                                     # w3
            _rep((Cb, 1)), _rep((Cb, 1)),                         # g1, b1
            _rep((Cb, 1)), _rep((Cb, 1)),                         # g2, b2
            _rep((Cout, 1)), _rep((Cout, 1)),                     # g3, b3
        ],
        out_specs=pl.BlockSpec((None, Cout, HW), lambda b: (b, 0, 0)),
        compiler_params=pltpu.CompilerParams(
            dimension_semantics=("parallel",)),
    )(xf, params["w1"], w2m, params["w3"],
      colv(params["g1"]), colv(params["b1"]),
      colv(params["g2"]), colv(params["b2"]),
      colv(params["g3"]), colv(params["b3"]))
    return out.reshape(N, Cout, H, W)


# -----------------------------------------------------------------------------
# Pure-JAX reference (matches the PyTorch module semantics)
# -----------------------------------------------------------------------------
def ref_forward(x, params, gb, go, eps=1e-5):
    def gn(v, gamma, beta, groups):
        N, C, H, W = v.shape
        vg = v.reshape(N, groups, C // groups, H * W)
        mean = vg.mean(axis=(2, 3), keepdims=True)
        var = ((vg - mean) ** 2).mean(axis=(2, 3), keepdims=True)
        vn = ((vg - mean) * jax.lax.rsqrt(var + eps)).reshape(N, C, H, W)
        return vn * gamma.reshape(1, C, 1, 1) + beta.reshape(1, C, 1, 1)

    def lrelu(v):
        return jnp.where(v >= 0, v, 0.2 * v)

    dn = ("NCHW", "OIHW", "NCHW")
    conv1 = lambda v, w: jax.lax.conv_general_dilated(
        v, w[:, :, None, None], (1, 1), "VALID", dimension_numbers=dn)

    h = conv1(x, params["w1"])
    h = lrelu(gn(h, params["g1"], params["b1"], gb))
    h = jax.lax.conv_general_dilated(h, params["w2"], (1, 1), "SAME",
                                     dimension_numbers=dn)
    h = lrelu(gn(h, params["g2"], params["b2"], gb))
    h = conv1(h, params["w3"])
    h = gn(h, params["g3"], params["b3"], go)
    return h


if __name__ == "__main__":
    # Module config: in_channels=16, out_channels=16, bottleneck_factor=1, dim=2
    N, Cin, H, W = 2, 16, 16, 16
    Cout = 16
    Cb = int(1.0 * Cout)           # bottleneck_channels
    gb = Cb // 8                   # GroupNorm groups (bottleneck)
    go = Cout // 8                 # GroupNorm groups (output)

    key = jax.random.PRNGKey(0)
    ks = jax.random.split(key, 10)
    params = {
        "w1": (0.2 * jax.random.normal(ks[0], (Cb, Cin))).astype(jnp.float32),
        "w2": (0.2 * jax.random.normal(ks[1], (Cb, Cb, 3, 3))).astype(jnp.float32),
        "w3": (0.2 * jax.random.normal(ks[2], (Cout, Cb))).astype(jnp.float32),
        "g1": (1.0 + 0.1 * jax.random.normal(ks[3], (Cb,))).astype(jnp.float32),
        "b1": (0.1 * jax.random.normal(ks[4], (Cb,))).astype(jnp.float32),
        "g2": (1.0 + 0.1 * jax.random.normal(ks[5], (Cb,))).astype(jnp.float32),
        "b2": (0.1 * jax.random.normal(ks[6], (Cb,))).astype(jnp.float32),
        "g3": (1.0 + 0.1 * jax.random.normal(ks[7], (Cout,))).astype(jnp.float32),
        "b3": (0.1 * jax.random.normal(ks[8], (Cout,))).astype(jnp.float32),
    }
    x = jax.random.normal(ks[9], (N, Cin, H, W), jnp.float32)   # NCHW like PyTorch

    out = jax.block_until_ready(res_map_2d(x, params, gb, go))
    ref = jax.block_until_ready(ref_forward(x, params, gb, go))
    assert out.shape == (N, Cout, H, W)
    np.testing.assert_allclose(np.asarray(out), np.asarray(ref),
                               rtol=1e-3, atol=1e-3)
    print("KERNEL_OK")
</pallas_src>

<mosaic_0001>
module attributes {stable_mosaic.version = 11 : i64} {
  func.func @_res_map_kernel(%arg0: i32, %arg1: memref<1x16x256xf32, #tpu.memory_space<vmem>>, %arg2: memref<16x16xf32, #tpu.memory_space<vmem>>, %arg3: memref<16x144xf32, #tpu.memory_space<vmem>>, %arg4: memref<16x16xf32, #tpu.memory_space<vmem>>, %arg5: memref<16x1xf32, #tpu.memory_space<vmem>>, %arg6: memref<16x1xf32, #tpu.memory_space<vmem>>, %arg7: memref<16x1xf32, #tpu.memory_space<vmem>>, %arg8: memref<16x1xf32, #tpu.memory_space<vmem>>, %arg9: memref<16x1xf32, #tpu.memory_space<vmem>>, %arg10: memref<16x1xf32, #tpu.memory_space<vmem>>, %arg11: memref<1x16x256xf32, #tpu.memory_space<vmem>>) attributes {dimension_semantics = [#tpu.dimension_semantics<parallel>], iteration_bounds = array<i64: 2>, scalar_prefetch = 0 : i64, scratch_operands = 0 : i64, tpu.core_type = #tpu.core_type<tc>, window_params = [{transform_indices = @transform_0, window_bounds = array<i64: 1, 16, 256>}, {pipeline_mode = #tpu.pipeline_mode<synchronous>, transform_indices = @transform_1, window_bounds = array<i64: 16, 16>}, {pipeline_mode = #tpu.pipeline_mode<synchronous>, transform_indices = @transform_2, window_bounds = array<i64: 16, 144>}, {pipeline_mode = #tpu.pipeline_mode<synchronous>, transform_indices = @transform_3, window_bounds = array<i64: 16, 16>}, {pipeline_mode = #tpu.pipeline_mode<synchronous>, transform_indices = @transform_4, window_bounds = array<i64: 16, 1>}, {pipeline_mode = #tpu.pipeline_mode<synchronous>, transform_indices = @transform_5, window_bounds = array<i64: 16, 1>}, {pipeline_mode = #tpu.pipeline_mode<synchronous>, transform_indices = @transform_6, window_bounds = array<i64: 16, 1>}, {pipeline_mode = #tpu.pipeline_mode<synchronous>, transform_indices = @transform_7, window_bounds = array<i64: 16, 1>}, {pipeline_mode = #tpu.pipeline_mode<synchronous>, transform_indices = @transform_8, window_bounds = array<i64: 16, 1>}, {pipeline_mode = #tpu.pipeline_mode<synchronous>, transform_indices = @transform_9, window_bounds = array<i64: 16, 1>}, {transform_indices = @transform_10, window_bounds = array<i64: 1, 16, 256>}]} {
    %c0 = arith.constant 0 : index
    %c0_0 = arith.constant 0 : index
    %c0_1 = arith.constant 0 : index
    %0 = vector.load %arg1[%c0, %c0_0, %c0_1] : memref<1x16x256xf32, #tpu.memory_space<vmem>>, vector<1x16x256xf32>
    %1 = vector.shape_cast %0 : vector<1x16x256xf32> to vector<16x256xf32>
    %c0_2 = arith.constant 0 : index
    %c0_3 = arith.constant 0 : index
    %2 = vector.load %arg2[%c0_2, %c0_3] : memref<16x16xf32, #tpu.memory_space<vmem>>, vector<16x16xf32>
    %cst = arith.constant dense<0.000000e+00> : vector<16x256xf32>
    %3 = tpu.matmul %2, %1, %cst {dimension_numbers = #tpu.dot_dimension_numbers<[1], [0], [0], [1], [0, 0, 1, 1], [], []>} : vector<16x16xf32>, vector<16x256xf32>, vector<16x256xf32> -> vector<16x256xf32>
    %c0_4 = arith.constant 0 : index
    %c0_5 = arith.constant 0 : index
    %4 = vector.load %arg5[%c0_4, %c0_5] : memref<16x1xf32, #tpu.memory_space<vmem>>, vector<16x1xf32>
    %c0_6 = arith.constant 0 : index
    %c0_7 = arith.constant 0 : index
    %5 = vector.load %arg6[%c0_6, %c0_7] : memref<16x1xf32, #tpu.memory_space<vmem>>, vector<16x1xf32>
    %6 = vector.extract_strided_slice %3 {offsets = [0, 0], sizes = [8, 256], strides = [1, 1]} : vector<16x256xf32> to vector<8x256xf32>
    %cst_8 = arith.constant dense<0.000000e+00> : vector<8xf32>
    %7 = vector.multi_reduction <add>, %6, %cst_8 [1] : vector<8x256xf32> to vector<8xf32>
    %8 = vector.shape_cast %7 : vector<8xf32> to vector<8x1xf32>
    %cst_9 = arith.constant dense<0.000000e+00> : vector<1xf32>
    %9 = vector.multi_reduction <add>, %8, %cst_9 [0] : vector<8x1xf32> to vector<1xf32>
    %10 = vector.shape_cast %9 : vector<1xf32> to vector<1x1xf32>
    %cst_10 = arith.constant 4.8828125E-4 : f32
    %11 = vector.broadcast %cst_10 : f32 to vector<1x1xf32>
    %12 = arith.mulf %10, %11 : vector<1x1xf32>
    %13 = vector.broadcast %12 : vector<1x1xf32> to vector<8x256xf32>
    %14 = arith.subf %6, %13 : vector<8x256xf32>
    %15 = arith.mulf %14, %14 : vector<8x256xf32>
    %cst_11 = arith.constant dense<0.000000e+00> : vector<8xf32>
    %16 = vector.multi_reduction <add>, %15, %cst_11 [1] : vector<8x256xf32> to vector<8xf32>
    %17 = vector.shape_cast %16 : vector<8xf32> to vector<8x1xf32>
    %cst_12 = arith.constant dense<0.000000e+00> : vector<1xf32>
    %18 = vector.multi_reduction <add>, %17, %cst_12 [0] : vector<8x1xf32> to vector<1xf32>
    %19 = vector.shape_cast %18 : vector<1xf32> to vector<1x1xf32>
    %cst_13 = arith.constant 4.8828125E-4 : f32
    %20 = vector.broadcast %cst_13 : f32 to vector<1x1xf32>
    %21 = arith.mulf %19, %20 : vector<1x1xf32>
    %cst_14 = arith.constant 9.99999974E-6 : f32
    %22 = vector.broadcast %cst_14 : f32 to vector<1x1xf32>
    %23 = arith.addf %21, %22 : vector<1x1xf32>
    %24 = math.rsqrt %23 : vector<1x1xf32>
    %25 = vector.broadcast %24 : vector<1x1xf32> to vector<8x256xf32>
    %26 = arith.mulf %14, %25 : vector<8x256xf32>
    %27 = vector.extract_strided_slice %3 {offsets = [8, 0], sizes = [8, 256], strides = [1, 1]} : vector<16x256xf32> to vector<8x256xf32>
    %cst_15 = arith.constant dense<0.000000e+00> : vector<8xf32>
    %28 = vector.multi_reduction <add>, %27, %cst_15 [1] : vector<8x256xf32> to vector<8xf32>
    %29 = vector.shape_cast %28 : vector<8xf32> to vector<8x1xf32>
    %cst_16 = arith.constant dense<0.000000e+00> : vector<1xf32>
    %30 = vector.multi_reduction <add>, %29, %cst_16 [0] : vector<8x1xf32> to vector<1xf32>
    %31 = vector.shape_cast %30 : vector<1xf32> to vector<1x1xf32>
    %cst_17 = arith.constant 4.8828125E-4 : f32
    %32 = vector.broadcast %cst_17 : f32 to vector<1x1xf32>
    %33 = arith.mulf %31, %32 : vector<1x1xf32>
    %34 = vector.broadcast %33 : vector<1x1xf32> to vector<8x256xf32>
    %35 = arith.subf %27, %34 : vector<8x256xf32>
    %36 = arith.mulf %35, %35 : vector<8x256xf32>
    %cst_18 = arith.constant dense<0.000000e+00> : vector<8xf32>
    %37 = vector.multi_reduction <add>, %36, %cst_18 [1] : vector<8x256xf32> to vector<8xf32>
    %38 = vector.shape_cast %37 : vector<8xf32> to vector<8x1xf32>
    %cst_19 = arith.constant dense<0.000000e+00> : vector<1xf32>
    %39 = vector.multi_reduction <add>, %38, %cst_19 [0] : vector<8x1xf32> to vector<1xf32>
    %40 = vector.shape_cast %39 : vector<1xf32> to vector<1x1xf32>
    %cst_20 = arith.constant 4.8828125E-4 : f32
    %41 = vector.broadcast %cst_20 : f32 to vector<1x1xf32>
    %42 = arith.mulf %40, %41 : vector<1x1xf32>
    %cst_21 = arith.constant 9.99999974E-6 : f32
    %43 = vector.broadcast %cst_21 : f32 to vector<1x1xf32>
    %44 = arith.addf %42, %43 : vector<1x1xf32>
    %45 = math.rsqrt %44 : vector<1x1xf32>
    %46 = vector.broadcast %45 : vector<1x1xf32> to vector<8x256xf32>
    %47 = arith.mulf %35, %46 : vector<8x256xf32>
    %48 = tpu.concatenate %26, %47 in 0 : vector<8x256xf32>, vector<8x256xf32> -> vector<16x256xf32>
    %49 = vector.broadcast %4 : vector<16x1xf32> to vector<16x256xf32>
    %50 = arith.mulf %48, %49 : vector<16x256xf32>
    %51 = vector.broadcast %5 : vector<16x1xf32> to vector<16x256xf32>
    %52 = arith.addf %50, %51 : vector<16x256xf32>
    %cst_22 = arith.constant 0.000000e+00 : f32
    %53 = vector.broadcast %cst_22 : f32 to vector<16x256xf32>
    %54 = arith.cmpf oge, %52, %53 : vector<16x256xf32>
    %cst_23 = arith.constant 2.000000e-01 : f32
    %55 = vector.broadcast %cst_23 : f32 to vector<16x256xf32>
    %56 = arith.mulf %55, %52 : vector<16x256xf32>
    %57 = arith.select %54, %52, %56 : vector<16x256xi1>, vector<16x256xf32>
    %58 = tpu.iota {dimensions = array<i32: 1>} : vector<16x256xi32>
    %c16_i32 = arith.constant 16 : i32
    %c0_i32 = arith.constant 0 : i32
    %59 = arith.cmpi eq, %c16_i32, %c0_i32 : i32
    %c1_i32 = arith.constant 1 : i32
    %60 = arith.select %59, %c1_i32, %c16_i32 : i32
    %61 = vector.broadcast %60 : i32 to vector<16x256xi32>
    %62 = arith.remsi %58, %61 : vector<16x256xi32>
    %c0_i32_24 = arith.constant 0 : i32
    %63 = vector.broadcast %c0_i32_24 : i32 to vector<16x256xi32>
    %64 = arith.cmpi ne, %62, %63 : vector<16x256xi32>
    %c0_i32_25 = arith.constant 0 : i32
    %65 = vector.broadcast %c0_i32_25 : i32 to vector<16x256xi32>
    %66 = arith.cmpi slt, %62, %65 : vector<16x256xi32>
    %c0_i32_26 = arith.constant 0 : i32
    %67 = arith.cmpi slt, %60, %c0_i32_26 : i32
    %68 = vector.broadcast %67 : i1 to vector<16x256xi1>
    %69 = vector.broadcast %68 : vector<16x256xi1> to vector<16x256xi1>
    %70 = arith.xori %66, %69 : vector<16x256xi1>
    %71 = arith.andi %70, %64 : vector<16x256xi1>
    %72 = vector.broadcast %60 : i32 to vector<16x256xi32>
    %73 = arith.addi %62, %72 : vector<16x256xi32>
    %74 = arith.select %71, %73, %62 : vector<16x256xi1>, vector<16x256xi32>
    %cst_27 = arith.constant 0.000000e+00 : f32
    %75 = vector.broadcast %cst_27 : f32 to vector<16x17xf32>
    %76 = vector.extract_strided_slice %57 {offsets = [0, 0], sizes = [16, 239], strides = [1, 1]} : vector<16x256xf32> to vector<16x239xf32>
    %77 = tpu.concatenate %75, %76 in 1 : vector<16x17xf32>, vector<16x239xf32> -> vector<16x256xf32>
    %c1_i32_28 = arith.constant 1 : i32
    %78 = vector.broadcast %c1_i32_28 : i32 to vector<16x256xi32>
    %79 = arith.cmpi sge, %74, %78 : vector<16x256xi32>
    %cst_29 = arith.constant 0.000000e+00 : f32
    %80 = vector.broadcast %cst_29 : f32 to vector<16x256xf32>
    %81 = arith.select %79, %77, %80 : vector<16x256xi1>, vector<16x256xf32>
    %cst_30 = arith.constant 0.000000e+00 : f32
    %82 = vector.broadcast %cst_30 : f32 to vector<16x16xf32>
    %83 = vector.extract_strided_slice %57 {offsets = [0, 0], sizes = [16, 240], strides = [1, 1]} : vector<16x256xf32> to vector<16x240xf32>
    %84 = tpu.concatenate %82, %83 in 1 : vector<16x16xf32>, vector<16x240xf32> -> vector<16x256xf32>
    %cst_31 = arith.constant 0.000000e+00 : f32
    %85 = vector.broadcast %cst_31 : f32 to vector<16x15xf32>
    %86 = vector.extract_strided_slice %57 {offsets = [0, 0], sizes = [16, 241], strides = [1, 1]} : vector<16x256xf32> to vector<16x241xf32>
    %87 = tpu.concatenate %85, %86 in 1 : vector<16x15xf32>, vector<16x241xf32> -> vector<16x256xf32>
    %c14_i32 = arith.constant 14 : i32
    %88 = vector.broadcast %c14_i32 : i32 to vector<16x256xi32>
    %89 = arith.cmpi sle, %74, %88 : vector<16x256xi32>
    %cst_32 = arith.constant 0.000000e+00 : f32
    %90 = vector.broadcast %cst_32 : f32 to vector<16x256xf32>
    %91 = arith.select %89, %87, %90 : vector<16x256xi1>, vector<16x256xf32>
    %cst_33 = arith.constant 0.000000e+00 : f32
    %92 = vector.broadcast %cst_33 : f32 to vector<16x1xf32>
    %93 = vector.extract_strided_slice %57 {offsets = [0, 0], sizes = [16, 255], strides = [1, 1]} : vector<16x256xf32> to vector<16x255xf32>
    %94 = tpu.concatenate %92, %93 in 1 : vector<16x1xf32>, vector<16x255xf32> -> vector<16x256xf32>
    %c1_i32_34 = arith.constant 1 : i32
    %95 = vector.broadcast %c1_i32_34 : i32 to vector<16x256xi32>
    %96 = arith.cmpi sge, %74, %95 : vector<16x256xi32>
    %cst_35 = arith.constant 0.000000e+00 : f32
    %97 = vector.broadcast %cst_35 : f32 to vector<16x256xf32>
    %98 = arith.select %96, %94, %97 : vector<16x256xi1>, vector<16x256xf32>
    %99 = vector.extract_strided_slice %57 {offsets = [0, 1], sizes = [16, 255], strides = [1, 1]} : vector<16x256xf32> to vector<16x255xf32>
    %cst_36 = arith.constant 0.000000e+00 : f32
    %100 = vector.broadcast %cst_36 : f32 to vector<16x1xf32>
    %101 = tpu.concatenate %99, %100 in 1 : vector<16x255xf32>, vector<16x1xf32> -> vector<16x256xf32>
    %c14_i32_37 = arith.constant 14 : i32
    %102 = vector.broadcast %c14_i32_37 : i32 to vector<16x256xi32>
    %103 = arith.cmpi sle, %74, %102 : vector<16x256xi32>
    %cst_38 = arith.constant 0.000000e+00 : f32
    %104 = vector.broadcast %cst_38 : f32 to vector<16x256xf32>
    %105 = arith.select %103, %101, %104 : vector<16x256xi1>, vector<16x256xf32>
    %106 = vector.extract_strided_slice %57 {offsets = [0, 15], sizes = [16, 241], strides = [1, 1]} : vector<16x256xf32> to vector<16x241xf32>
    %cst_39 = arith.constant 0.000000e+00 : f32
    %107 = vector.broadcast %cst_39 : f32 to vector<16x15xf32>
    %108 = tpu.concatenate %106, %107 in 1 : vector<16x241xf32>, vector<16x15xf32> -> vector<16x256xf32>
    %c1_i32_40 = arith.constant 1 : i32
    %109 = vector.broadcast %c1_i32_40 : i32 to vector<16x256xi32>
    %110 = arith.cmpi sge, %74, %109 : vector<16x256xi32>
    %cst_41 = arith.constant 0.000000e+00 : f32
    %111 = vector.broadcast %cst_41 : f32 to vector<16x256xf32>
    %112 = arith.select %110, %108, %111 : vector<16x256xi1>, vector<16x256xf32>
    %113 = vector.extract_strided_slice %57 {offsets = [0, 16], sizes = [16, 240], strides = [1, 1]} : vector<16x256xf32> to vector<16x240xf32>
    %cst_42 = arith.constant 0.000000e+00 : f32
    %114 = vector.broadcast %cst_42 : f32 to vector<16x16xf32>
    %115 = tpu.concatenate %113, %114 in 1 : vector<16x240xf32>, vector<16x16xf32> -> vector<16x256xf32>
    %116 = vector.extract_strided_slice %57 {offsets = [0, 17], sizes = [16, 239], strides = [1, 1]} : vector<16x256xf32> to vector<16x239xf32>
    %cst_43 = arith.constant 0.000000e+00 : f32
    %117 = vector.broadcast %cst_43 : f32 to vector<16x17xf32>
    %118 = tpu.concatenate %116, %117 in 1 : vector<16x239xf32>, vector<16x17xf32> -> vector<16x256xf32>
    %c14_i32_44 = arith.constant 14 : i32
    %119 = vector.broadcast %c14_i32_44 : i32 to vector<16x256xi32>
    %120 = arith.cmpi sle, %74, %119 : vector<16x256xi32>
    %cst_45 = arith.constant 0.000000e+00 : f32
    %121 = vector.broadcast %cst_45 : f32 to vector<16x256xf32>
    %122 = arith.select %120, %118, %121 : vector<16x256xi1>, vector<16x256xf32>
    %123 = tpu.concatenate %81, %84, %91, %98, %57, %105, %112, %115, %122 in 0 : vector<16x256xf32>, vector<16x256xf32>, vector<16x256xf32>, vector<16x256xf32>, vector<16x256xf32>, vector<16x256xf32>, vector<16x256xf32>, vector<16x256xf32>, vector<16x256xf32> -> vector<144x256xf32>
    %c0_46 = arith.constant 0 : index
    %c0_47 = arith.constant 0 : index
    %124 = vector.load %arg3[%c0_46, %c0_47] : memref<16x144xf32, #tpu.memory_space<vmem>>, vector<16x144xf32>
    %cst_48 = arith.constant dense<0.000000e+00> : vector<16x256xf32>
    %125 = tpu.matmul %124, %123, %cst_48 {dimension_numbers = #tpu.dot_dimension_numbers<[1], [0], [0], [1], [0, 0, 1, 1], [], []>} : vector<16x144xf32>, vector<144x256xf32>, vector<16x256xf32> -> vector<16x256xf32>
    %c0_49 = arith.constant 0 : index
    %c0_50 = arith.constant 0 : index
    %126 = vector.load %arg7[%c0_49, %c0_50] : memref<16x1xf32, #tpu.memory_space<vmem>>, vector<16x1xf32>
    %c0_51 = arith.constant 0 : index
    %c0_52 = arith.constant 0 : index
    %127 = vector.load %arg8[%c0_51, %c0_52] : memref<16x1xf32, #tpu.memory_space<vmem>>, vector<16x1xf32>
    %128 = vector.extract_strided_slice %125 {offsets = [0, 0], sizes = [8, 256], strides = [1, 1]} : vector<16x256xf32> to vector<8x256xf32>
    %cst_53 = arith.constant dense<0.000000e+00> : vector<8xf32>
    %129 = vector.multi_reduction <add>, %128, %cst_53 [1] : vector<8x256xf32> to vector<8xf32>
    %130 = vector.shape_cast %129 : vector<8xf32> to vector<8x1xf32>
    %cst_54 = arith.constant dense<0.000000e+00> : vector<1xf32>
    %131 = vector.multi_reduction <add>, %130, %cst_54 [0] : vector<8x1xf32> to vector<1xf32>
    %132 = vector.shape_cast %131 : vector<1xf32> to vector<1x1xf32>
    %cst_55 = arith.constant 4.8828125E-4 : f32
    %133 = vector.broadcast %cst_55 : f32 to vector<1x1xf32>
    %134 = arith.mulf %132, %133 : vector<1x1xf32>
    %135 = vector.broadcast %134 : vector<1x1xf32> to vector<8x256xf32>
    %136 = arith.subf %128, %135 : vector<8x256xf32>
    %137 = arith.mulf %136, %136 : vector<8x256xf32>
    %cst_56 = arith.constant dense<0.000000e+00> : vector<8xf32>
    %138 = vector.multi_reduction <add>, %137, %cst_56 [1] : vector<8x256xf32> to vector<8xf32>
    %139 = vector.shape_cast %138 : vector<8xf32> to vector<8x1xf32>
    %cst_57 = arith.constant dense<0.000000e+00> : vector<1xf32>
    %140 = vector.multi_reduction <add>, %139, %cst_57 [0] : vector<8x1xf32> to vector<1xf32>
    %141 = vector.shape_cast %140 : vector<1xf32> to vector<1x1xf32>
    %cst_58 = arith.constant 4.8828125E-4 : f32
    %142 = vector.broadcast %cst_58 : f32 to vector<1x1xf32>
    %143 = arith.mulf %141, %142 : vector<1x1xf32>
    %cst_59 = arith.constant 9.99999974E-6 : f32
    %144 = vector.broadcast %cst_59 : f32 to vector<1x1xf32>
    %145 = arith.addf %143, %144 : vector<1x1xf32>
    %146 = math.rsqrt %145 : vector<1x1xf32>
    %147 = vector.broadcast %146 : vector<1x1xf32> to vector<8x256xf32>
    %148 = arith.mulf %136, %147 : vector<8x256xf32>
    %149 = vector.extract_strided_slice %125 {offsets = [8, 0], sizes = [8, 256], strides = [1, 1]} : vector<16x256xf32> to vector<8x256xf32>
    %cst_60 = arith.constant dense<0.000000e+00> : vector<8xf32>
    %150 = vector.multi_reduction <add>, %149, %cst_60 [1] : vector<8x256xf32> to vector<8xf32>
    %151 = vector.shape_cast %150 : vector<8xf32> to vector<8x1xf32>
    %cst_61 = arith.constant dense<0.000000e+00> : vector<1xf32>
    %152 = vector.multi_reduction <add>, %151, %cst_61 [0] : vector<8x1xf32> to vector<1xf32>
    %153 = vector.shape_cast %152 : vector<1xf32> to vector<1x1xf32>
    %cst_62 = arith.constant 4.8828125E-4 : f32
    %154 = vector.broadcast %cst_62 : f32 to vector<1x1xf32>
    %155 = arith.mulf %153, %154 : vector<1x1xf32>
    %156 = vector.broadcast %155 : vector<1x1xf32> to vector<8x256xf32>
    %157 = arith.subf %149, %156 : vector<8x256xf32>
    %158 = arith.mulf %157, %157 : vector<8x256xf32>
    %cst_63 = arith.constant dense<0.000000e+00> : vector<8xf32>
    %159 = vector.multi_reduction <add>, %158, %cst_63 [1] : vector<8x256xf32> to vector<8xf32>
    %160 = vector.shape_cast %159 : vector<8xf32> to vector<8x1xf32>
    %cst_64 = arith.constant dense<0.000000e+00> : vector<1xf32>
    %161 = vector.multi_reduction <add>, %160, %cst_64 [0] : vector<8x1xf32> to vector<1xf32>
    %162 = vector.shape_cast %161 : vector<1xf32> to vector<1x1xf32>
    %cst_65 = arith.constant 4.8828125E-4 : f32
    %163 = vector.broadcast %cst_65 : f32 to vector<1x1xf32>
    %164 = arith.mulf %162, %163 : vector<1x1xf32>
    %cst_66 = arith.constant 9.99999974E-6 : f32
    %165 = vector.broadcast %cst_66 : f32 to vector<1x1xf32>
    %166 = arith.addf %164, %165 : vector<1x1xf32>
    %167 = math.rsqrt %166 : vector<1x1xf32>
    %168 = vector.broadcast %167 : vector<1x1xf32> to vector<8x256xf32>
    %169 = arith.mulf %157, %168 : vector<8x256xf32>
    %170 = tpu.concatenate %148, %169 in 0 : vector<8x256xf32>, vector<8x256xf32> -> vector<16x256xf32>
    %171 = vector.broadcast %126 : vector<16x1xf32> to vector<16x256xf32>
    %172 = arith.mulf %170, %171 : vector<16x256xf32>
    %173 = vector.broadcast %127 : vector<16x1xf32> to vector<16x256xf32>
    %174 = arith.addf %172, %173 : vector<16x256xf32>
    %cst_67 = arith.constant 0.000000e+00 : f32
    %175 = vector.broadcast %cst_67 : f32 to vector<16x256xf32>
    %176 = arith.cmpf oge, %174, %175 : vector<16x256xf32>
    %cst_68 = arith.constant 2.000000e-01 : f32
    %177 = vector.broadcast %cst_68 : f32 to vector<16x256xf32>
    %178 = arith.mulf %177, %174 : vector<16x256xf32>
    %179 = arith.select %176, %174, %178 : vector<16x256xi1>, vector<16x256xf32>
    %c0_69 = arith.constant 0 : index
    %c0_70 = arith.constant 0 : index
    %180 = vector.load %arg4[%c0_69, %c0_70] : memref<16x16xf32, #tpu.memory_space<vmem>>, vector<16x16xf32>
    %cst_71 = arith.constant dense<0.000000e+00> : vector<16x256xf32>
    %181 = tpu.matmul %180, %179, %cst_71 {dimension_numbers = #tpu.dot_dimension_numbers<[1], [0], [0], [1], [0, 0, 1, 1], [], []>} : vector<16x16xf32>, vector<16x256xf32>, vector<16x256xf32> -> vector<16x256xf32>
    %c0_72 = arith.constant 0 : index
    %c0_73 = arith.constant 0 : index
    %182 = vector.load %arg9[%c0_72, %c0_73] : memref<16x1xf32, #tpu.memory_space<vmem>>, vector<16x1xf32>
    %c0_74 = arith.constant 0 : index
    %c0_75 = arith.constant 0 : index
    %183 = vector.load %arg10[%c0_74, %c0_75] : memref<16x1xf32, #tpu.memory_space<vmem>>, vector<16x1xf32>
    %184 = vector.extract_strided_slice %181 {offsets = [0, 0], sizes = [8, 256], strides = [1, 1]} : vector<16x256xf32> to vector<8x256xf32>
    %cst_76 = arith.constant dense<0.000000e+00> : vector<8xf32>
    %185 = vector.multi_reduction <add>, %184, %cst_76 [1] : vector<8x256xf32> to vector<8xf32>
    %186 = vector.shape_cast %185 : vector<8xf32> to vector<8x1xf32>
    %cst_77 = arith.constant dense<0.000000e+00> : vector<1xf32>
    %187 = vector.multi_reduction <add>, %186, %cst_77 [0] : vector<8x1xf32> to vector<1xf32>
    %188 = vector.shape_cast %187 : vector<1xf32> to vector<1x1xf32>
    %cst_78 = arith.constant 4.8828125E-4 : f32
    %189 = vector.broadcast %cst_78 : f32 to vector<1x1xf32>
    %190 = arith.mulf %188, %189 : vector<1x1xf32>
    %191 = vector.broadcast %190 : vector<1x1xf32> to vector<8x256xf32>
    %192 = arith.subf %184, %191 : vector<8x256xf32>
    %193 = arith.mulf %192, %192 : vector<8x256xf32>
    %cst_79 = arith.constant dense<0.000000e+00> : vector<8xf32>
    %194 = vector.multi_reduction <add>, %193, %cst_79 [1] : vector<8x256xf32> to vector<8xf32>
    %195 = vector.shape_cast %194 : vector<8xf32> to vector<8x1xf32>
    %cst_80 = arith.constant dense<0.000000e+00> : vector<1xf32>
    %196 = vector.multi_reduction <add>, %195, %cst_80 [0] : vector<8x1xf32> to vector<1xf32>
    %197 = vector.shape_cast %196 : vector<1xf32> to vector<1x1xf32>
    %cst_81 = arith.constant 4.8828125E-4 : f32
    %198 = vector.broadcast %cst_81 : f32 to vector<1x1xf32>
    %199 = arith.mulf %197, %198 : vector<1x1xf32>
    %cst_82 = arith.constant 9.99999974E-6 : f32
    %200 = vector.broadcast %cst_82 : f32 to vector<1x1xf32>
    %201 = arith.addf %199, %200 : vector<1x1xf32>
    %202 = math.rsqrt %201 : vector<1x1xf32>
    %203 = vector.broadcast %202 : vector<1x1xf32> to vector<8x256xf32>
    %204 = arith.mulf %192, %203 : vector<8x256xf32>
    %205 = vector.extract_strided_slice %181 {offsets = [8, 0], sizes = [8, 256], strides = [1, 1]} : vector<16x256xf32> to vector<8x256xf32>
    %cst_83 = arith.constant dense<0.000000e+00> : vector<8xf32>
    %206 = vector.multi_reduction <add>, %205, %cst_83 [1] : vector<8x256xf32> to vector<8xf32>
    %207 = vector.shape_cast %206 : vector<8xf32> to vector<8x1xf32>
    %cst_84 = arith.constant dense<0.000000e+00> : vector<1xf32>
    %208 = vector.multi_reduction <add>, %207, %cst_84 [0] : vector<8x1xf32> to vector<1xf32>
    %209 = vector.shape_cast %208 : vector<1xf32> to vector<1x1xf32>
    %cst_85 = arith.constant 4.8828125E-4 : f32
    %210 = vector.broadcast %cst_85 : f32 to vector<1x1xf32>
    %211 = arith.mulf %209, %210 : vector<1x1xf32>
    %212 = vector.broadcast %211 : vector<1x1xf32> to vector<8x256xf32>
    %213 = arith.subf %205, %212 : vector<8x256xf32>
    %214 = arith.mulf %213, %213 : vector<8x256xf32>
    %cst_86 = arith.constant dense<0.000000e+00> : vector<8xf32>
    %215 = vector.multi_reduction <add>, %214, %cst_86 [1] : vector<8x256xf32> to vector<8xf32>
    %216 = vector.shape_cast %215 : vector<8xf32> to vector<8x1xf32>
    %cst_87 = arith.constant dense<0.000000e+00> : vector<1xf32>
    %217 = vector.multi_reduction <add>, %216, %cst_87 [0] : vector<8x1xf32> to vector<1xf32>
    %218 = vector.shape_cast %217 : vector<1xf32> to vector<1x1xf32>
    %cst_88 = arith.constant 4.8828125E-4 : f32
    %219 = vector.broadcast %cst_88 : f32 to vector<1x1xf32>
    %220 = arith.mulf %218, %219 : vector<1x1xf32>
    %cst_89 = arith.constant 9.99999974E-6 : f32
    %221 = vector.broadcast %cst_89 : f32 to vector<1x1xf32>
    %222 = arith.addf %220, %221 : vector<1x1xf32>
    %223 = math.rsqrt %222 : vector<1x1xf32>
    %224 = vector.broadcast %223 : vector<1x1xf32> to vector<8x256xf32>
    %225 = arith.mulf %213, %224 : vector<8x256xf32>
    %226 = tpu.concatenate %204, %225 in 0 : vector<8x256xf32>, vector<8x256xf32> -> vector<16x256xf32>
    %227 = vector.broadcast %182 : vector<16x1xf32> to vector<16x256xf32>
    %228 = arith.mulf %226, %227 : vector<16x256xf32>
    %229 = vector.broadcast %183 : vector<16x1xf32> to vector<16x256xf32>
    %230 = arith.addf %228, %229 : vector<16x256xf32>
    %c0_90 = arith.constant 0 : index
    %c0_91 = arith.constant 0 : index
    %c0_92 = arith.constant 0 : index
    %231 = vector.load %arg11[%c0_90, %c0_91, %c0_92] : memref<1x16x256xf32, #tpu.memory_space<vmem>>, vector<1x16x256xf32>
    %232 = vector.shape_cast %231 : vector<1x16x256xf32> to vector<16x256xf32>
    %233 = vector.shape_cast %230 : vector<16x256xf32> to vector<1x16x256xf32>
    tpu.vector_store %arg11[%c0_90, %c0_91, %c0_92], %233 {strides = array<i32>} : memref<1x16x256xf32, #tpu.memory_space<vmem>>, vector<1x16x256xf32>,
    return
  }
  func.func @transform_0(%arg0: i32) -> (i32, i32, i32) {
    %c0_i32 = arith.constant 0 : i32
    %c0_i32_0 = arith.constant 0 : i32
    %c0_i32_1 = arith.constant 0 : i32
    return %arg0, %c0_i32, %c0_i32_0 : i32, i32, i32
  }
  func.func @transform_1(%arg0: i32) -> (i32, i32) {
    %c0_i32 = arith.constant 0 : i32
    %c0_i32_0 = arith.constant 0 : i32
    %c0_i32_1 = arith.constant 0 : i32
    return %c0_i32, %c0_i32_0 : i32, i32
  }
  func.func @transform_2(%arg0: i32) -> (i32, i32) {
    %c0_i32 = arith.constant 0 : i32
    %c0_i32_0 = arith.constant 0 : i32
    %c0_i32_1 = arith.constant 0 : i32
    return %c0_i32, %c0_i32_0 : i32, i32
  }
  func.func @transform_3(%arg0: i32) -> (i32, i32) {
    %c0_i32 = arith.constant 0 : i32
    %c0_i32_0 = arith.constant 0 : i32
    %c0_i32_1 = arith.constant 0 : i32
    return %c0_i32, %c0_i32_0 : i32, i32
  }
  func.func @transform_4(%arg0: i32) -> (i32, i32) {
    %c0_i32 = arith.constant 0 : i32
    %c0_i32_0 = arith.constant 0 : i32
    %c0_i32_1 = arith.constant 0 : i32
    return %c0_i32, %c0_i32_0 : i32, i32
  }
  func.func @transform_5(%arg0: i32) -> (i32, i32) {
    %c0_i32 = arith.constant 0 : i32
    %c0_i32_0 = arith.constant 0 : i32
    %c0_i32_1 = arith.constant 0 : i32
    return %c0_i32, %c0_i32_0 : i32, i32
  }
  func.func @transform_6(%arg0: i32) -> (i32, i32) {
    %c0_i32 = arith.constant 0 : i32
    %c0_i32_0 = arith.constant 0 : i32
    %c0_i32_1 = arith.constant 0 : i32
    return %c0_i32, %c0_i32_0 : i32, i32
  }
  func.func @transform_7(%arg0: i32) -> (i32, i32) {
    %c0_i32 = arith.constant 0 : i32
    %c0_i32_0 = arith.constant 0 : i32
    %c0_i32_1 = arith.constant 0 : i32
    return %c0_i32, %c0_i32_0 : i32, i32
  }
  func.func @transform_8(%arg0: i32) -> (i32, i32) {
    %c0_i32 = arith.constant 0 : i32
    %c0_i32_0 = arith.constant 0 : i32
    %c0_i32_1 = arith.constant 0 : i32
    return %c0_i32, %c0_i32_0 : i32, i32
  }
  func.func @transform_9(%arg0: i32) -> (i32, i32) {
    %c0_i32 = arith.constant 0 : i32
    %c0_i32_0 = arith.constant 0 : i32
    %c0_i32_1 = arith.constant 0 : i32
    return %c0_i32, %c0_i32_0 : i32, i32
  }
  func.func @transform_10(%arg0: i32) -> (i32, i32, i32) {
    %c0_i32 = arith.constant 0 : i32
    %c0_i32_0 = arith.constant 0 : i32
    %c0_i32_1 = arith.constant 0 : i32
    return %arg0, %c0_i32, %c0_i32_0 : i32, i32, i32
  }
}

</mosaic_0001>

<bundles_post_ra>
// kernel: tpu_custom_call.1
= control target key start
LH: loop header
LB: loop body
LE: loop exit
PB: predicated region body
PF: predicated region fallthrough
CT: control target
= control target key end

     0   :  { %15 = vsyncpa [#allocation3], 0  ;;  %s1939_s0 = inlined_call_operand.vmem [shape: f32[2,16,256], index: 0, kind: input, shape index: {}]   ;;  %s1940_s1 = inlined_call_operand.hbm [shape: f32[16,16], index: 1, kind: input, shape index: {}]   ;;  %s1941_s2 = inlined_call_operand.vmem [shape: f32[16,144], index: 2, kind: input, shape index: {}]   ;;  %s1942_s3 = inlined_call_operand.vmem [shape: f32[16,16], index: 3, kind: input, shape index: {}]   ;;  %s1943_s4 = inlined_call_operand.vmem [shape: f32[16,1], index: 4, kind: input, shape index: {}]   ;;  %s1944_s5 = inlined_call_operand.vmem [shape: f32[16,1], index: 5, kind: input, shape index: {}]   ;;  %s1945_s6 = inlined_call_operand.vmem [shape: f32[16,1], index: 6, kind: input, shape index: {}]   ;;  %s1946_s7 = inlined_call_operand.vmem [shape: f32[16,1], index: 7, kind: input, shape index: {}]   ;;  %s1947_s8 = inlined_call_operand.vmem [shape: f32[16,1], index: 8, kind: input, shape index: {}]   ;;  %s1948_s9 = inlined_call_operand.vmem [shape: f32[16,1], index: 9, kind: input, shape index: {}]   ;;  %s1949_s10 = inlined_call_operand.hbm [shape: f32[2,16,256], index: 10, kind: output, shape index: {}]  }
   0x1   :  { %16 = vsyncpa [#allocation4], 0 }
   0x2   :  { %18 = vsyncpa [#allocation4 + $0x1], 0  ;;  %s1642_s13 = smov 0   ;;  %s1644_s14 = smov 0  }
   0x3   :  { %s1646_s15 = smov 0   ;;  %s1648_s16 = smov 0  }
   0x4 LB: > { %s1663_s17 = sadd.s32 4294967295, %s1570_s16   ;;  %s1209_s18 = sadd.s32 4294967294, %s1570_s16   ;;  %s1570_s16 = sphi %s1648_s16, %s1977_s16   ;;  %s1566_s15 = sphi %s1646_s15, %s1976_s15   ;;  %s1562_s14 = sphi %s1644_s14, %s1975_s14   ;;  %s1558_s13 = sphi %s1642_s13, %s1974_s13  }
   0x5   : > { %s1667_s19 = sadd.s32 1, %s1570_s16   ;;  %s246_s20 = sadd.s32 1, %s1566_s15 }
   0x6   : > { %s243_s21 = ssub.s32 %s1570_s16, %s1667_s19  ;;  %p256_p0 = scmp.ne.s32.totalorder %s1566_s15, %s1562_s14 }
   0x7   : > { %p244_p1 = scmp.eq.s32.totalorder %s243_s21, 0  ;;  %p257_p2 = scmp.eq.s32.totalorder %s1663_s17, 1 }
   0x8   : > { %p262_p3 = scmp.ne.s32.totalorder %s1562_s14, %s1558_s13  ;;  %p263_p4 = scmp.eq.s32.totalorder %s1209_s18, 1 }
   0x9   : > { %s1678_s22 = scalar_select %p244_p1, %s1566_s15, %s246_s20  }
   0xa   : > { %p1680_p5 = por %p257_p2, %p256_p0  ;;  %p1684_p6 = por %p263_p4, %p262_p3 }
   0xb   : > { %p1210_p7 = scmp.ge.s32.totalorder %s1570_s16, 1  ;;  %p270_p8 = scmp.lt.s32.totalorder %s1570_s16, 3 }
   0xc   : > { %s1954_s23 = scalar_select %p1680_p5, 1, 0 }
   0xd   : > { %s1955_s24 = scalar_select %p1684_p6, 1, 0 }
   0xe   : > { %p1950_p9 = scmp.eq.s32.totalorder %s1663_s17, 0  ;;  %p1691_p10 = pnand %p1210_p7, %p270_p8 }
   0xf   : > { %s1572_s26 = smov [#allocation2]   ;;  %s1476_s11 = scalar_lea.hbm %s1940_s1, 256 }
  0x10   : > { %s1956_s25 = scalar_select %p1691_p10, 1, 0 }
  0x11   : > { %s282_s27 = sshll.u32 %s1572_s26, 4  ;;  %p1325_p11 = pneg %p1691_p10  ;;  %s283_s27 = int_to_ptr.vmem [resolvable:$true] %s282_s27 }
  0x12   : > { %p1477_p13 = scmp.ne.s32.totalorder %s1940_s1, %s1476_s11  ;;  %p1483_p3 = scmp.lt.u32.totalorder %s1476_s11, %s1940_s1 }
  0x13   : > { %p1699_p12 = pnand %p1950_p9, %p1325_p11 }
  0x15   : > { %p1478_p0 = pneg %p1699_p12 }
  0x17   : > { %p1479_p1 = pnand %p1478_p0, %p1477_p13 }
  0x19   : > { %p1480_p2 = pneg %p1479_p1 }
  0x1b   : > { %p1485_p4 = pnand %p1483_p3, %p1480_p2 }
  0x1d   : > { %1488 = shalt.err (!%p1485_p4)
}
  0x1e   : > { %s1489_s26 = scalar_lea.vmem %s283_s27, 256  ;;  %p1497_p9 = scmp.lt.s32.totalorder %s283_s27, %s283_s27 }
  0x1f   : > { %p1490_p7 = scmp.ne.s32.totalorder %s283_s27, %s1489_s26  ;;  %p1498_p6 = scmp.lt.s32.totalorder %s1489_s26, %s1489_s26 }
  0x21   : > { %p1492_p8 = pnand %p1490_p7, %p1478_p0  ;;  %p1499_p5 = por %p1498_p6, %p1497_p9 }
  0x23   : > { %p1493_p11 = pneg %p1492_p8 }
  0x25   : > { %p1500_p10 = pnand %p1499_p5, %p1493_p11 }
  0x27   : > { %1503 = shalt.err (!%p1500_p10)
}
  0x28   : > { %s1573_s29 = smov 128   ;;  %s1574_s30 = smov 8  }
  0x29   : > { %1328 = dma.hbm_to_vmem [thread:$0]  (!%p1699_p12), %s1940_s1, 256, %s283_s27, [#allocation3], %s1573_s29, %s1573_s29, %s1574_s30  }
  0x2a   : > { %p1958_p13 = scmp.ne.s32.totalorder %s1956_s25, 0 }
  0x2b   : > { %p1959_p1 = scmp.eq.s32.totalorder (!%p1958_p13), %s1663_s17, 0 }
  0x2c   : > { %330 = sbr.rel (%p1958_p13) target bundleno = 1924 (0x784), region = 60 }
  0x33   : > { %1549 = dma.done.wait (%p1959_p1), [#allocation3], 256   ;;  %p1960_p0 = pmov %p1959_p1 }
  0x34   : > { %p368_p5 = scmp.lt.s32.totalorder %s1663_s17, 1  ;;  %v1575_v0 = vmov 0.0   ;;  %v377_v7 = vld [vmem:[#allocation2] sm:$0xff]  ;;  %vm379_vm0 = vcmask 130048   ;;  %v378_v8 = vld [vmem:[#allocation2 + $0x8] sm:$0xff]  ;;  %v1576_v10 = vmov 0  }
  0x35   : > { %1551 = vsyncadd (%p1960_p0), [#allocation3], 4294967040  ;;  %450 = vmatprep.mubr.f32.mxu0 %v1575_v0  ;;  %v464_v9 = vld [vmem:[%s1943_s4 + $0x8] sm:$0xff]  ;;  %1383 = vset.pattern.permute.xlu1 %v1576_v10  ;;  %v463_v17 = vld [vmem:[%s1943_s4] sm:$0xff]  ;;  %s1577_s20 = smov 17   ;;  %s1578_s21 = smov 15  }
  0x36   : > { %s369_s28 = scalar_select %p368_p5, %s1663_s17, 1  ;;  %1382 = vset.pattern.permute.xlu0 %v1576_v10  ;;  %530 = vperm.xlu1 %1383, %v464_v9   ;;  %v465_v44 = vld [vmem:[%s1944_s5] sm:$0xff]  ;;  %v466_v45 = vld [vmem:[%s1944_s5 + $0x8] sm:$0xff]  ;;  %vm602_vm5 = vcmask 138240   ;;  %vm1782_vm10 = vmneg %vm379_vm0  ;;  %vm641_vm11 = vcmask 121856  }
  0x37   : > { %s1580_s25 = smov 1   ;;  %s1581_s26 = smov 127   ;;  %vm1274_vm12 = vmpackc.low %vm1782_vm10, %vm1782_vm10 }
  0x38   : > { %s1259_s11 = sshll.u32 %s369_s28, 5  ;;  %s1582_s29 = smov 113  }
  0x39   : > { %s372_s27 = scalar_lea.vmem %s1939_s0, %s1259_s11  ;;  %s1583_s30 = smov 112  }
  0x3a   : > { %v374_v1 = vld [vmem:[%s372_s27 + $0x8] sm:$0xff]  ;;  %v376_v2 = vld [vmem:[%s372_s27 + $0x18] sm:$0xff]  ;;  %v373_v3 = vld [vmem:[%s372_s27] sm:$0xff]  ;;  %s1584_s12 = smov 111   ;;  %s1260_s11 = sshll.u32 %s1663_s17, 9 }
  0x3b   : > { %v1261_v4 = vpack.c.bf16 %v376_v2, %v374_v1  ;;  %v375_v5 = vld [vmem:[%s372_s27 + $0x10] sm:$0xff]  ;;  %s1953_s27 = smov 16   ;;  %p1971_p9 = scmp.ne.s32.totalorder %s1954_s23, 0 }
  0x3c   : > { %v1263_v6 = vpack.c.bf16 %v375_v5, %v373_v3 }
  0x3d   : > { %1262 = vmatprep.subr.bf16.mxu0 %v1261_v4 }
  0x3e   : > { %1264 = vmatpush1.bf16.msra.mxu0 %v1263_v6 }
  0x41   : > { %1218 = vmatmul.mubr.msk.f32.vlgmr.msra.gmra.mrb[0].mxu0 %vm379_vm0, %v377_v7 }
  0x42   : > { %456 = vmatprep.mubr.f32.mxu0 %v1575_v0 }
  0x45   : > { %1219 = vmatmul.mubr.msk.f32.gmra.mrb[2].mxu0 %vm379_vm0, %v378_v8 }
  0x46   : > { %1016 = vmatprep.mubr.f32.mxu0 %v1575_v0 }
  0xb5   : > { %v531_v46 = vpop.permute.xlu1 %530 }
 0x114   : > { %v452_v11 = vpop.f32.mrb[0].mxu0 }
 0x115   : > { %v454_v12 = vpop.f32.mrb[1].mxu0 }
 0x116   : > { %v467_v13 = vadd.f32 %v454_v12, %v452_v11 }
 0x118   : > { %468 = vadd.xlane.f32.xlu0 %v467_v13  ;;  %v458_v14 = vpop.f32.mrb[2].mxu0 }
 0x119   : > { %v460_v15 = vpop.f32.mrb[3].mxu0 }
 0x11a   : > { %v495_v16 = vadd.f32 %v460_v15, %v458_v14 }
 0x11c   : > { %496 = vadd.xlane.f32.xlu0 %v495_v16 }
 0x132   : > { %525 = vperm.xlu0 %1382, %v463_v17  }
 0x1a5   : > { %v469_v18 = vpop.xlane.xlu0 %468 }
 0x1a6   : > { %v470_v19 = vrot.slane %v469_v18, 4 }
 0x1a8   : > { %v471_v20 = vadd.f32 %v470_v19, %v469_v18 }
 0x1a9   : > { %v497_v21 = vpop.xlane.xlu0 %496 }
 0x1aa   : > { %v472_v22 = vrot.slane %v471_v20, 2  ;;  %v498_v23 = vrot.slane %v497_v21, 4 }
 0x1ac   : > { %v473_v24 = vadd.f32 %v472_v22, %v471_v20  ;;  %v499_v25 = vadd.f32 %v498_v23, %v497_v21 }
 0x1ae   : > { %v474_v26 = vrot.slane %v473_v24, 1  ;;  %v500_v27 = vrot.slane %v499_v25, 2 }
 0x1b0   : > { %v475_v28 = vadd.f32 %v474_v26, %v473_v24  ;;  %v501_v29 = vadd.f32 %v500_v27, %v499_v25 }
 0x1b1   : > { %v526_v3 = vpop.permute.xlu0 %525 }
 0x1b2   : > { %v476_v30 = vmul.f32 0.00048828125, %v475_v28  ;;  %v502_v31 = vrot.slane %v501_v29, 1 }
 0x1b4   : > { %v503_v32 = vadd.f32 %v502_v31, %v501_v29  ;;  %v477_v33 = vsub.f32 %v452_v11, %v476_v30  ;;  %v478_v34 = vsub.f32 %v454_v12, %v476_v30 }
 0x1b6   : > { %v504_v35 = vmul.f32 0.00048828125, %v503_v32  ;;  %v479_v36 = vmul.f32 %v477_v33, %v477_v33  ;;  %v480_v37 = vmul.f32 %v478_v34, %v478_v34 }
 0x1b8   : > { %v481_v38 = vadd.f32 %v480_v37, %v479_v36  ;;  %v505_v39 = vsub.f32 %v458_v14, %v504_v35  ;;  %v506_v40 = vsub.f32 %v460_v15, %v504_v35 }
 0x1ba   : > { %482 = vadd.xlane.f32.xlu1 %v481_v38  ;;  %v507_v41 = vmul.f32 %v505_v39, %v505_v39  ;;  %v508_v42 = vmul.f32 %v506_v40, %v506_v40 }
 0x1bc   : > { %v509_v43 = vadd.f32 %v508_v42, %v507_v41 }
 0x1be   : > { %510 = vadd.xlane.f32.xlu1 %v509_v43 }
 0x1cf   : > { %539 = vperm.xlu1 %1383, %v465_v44  }
 0x1d3   : > { %544 = vperm.xlu1 %1383, %v466_v45  }
 0x247   : > { %v483_v47 = vpop.xlane.xlu1 %482 }
 0x248   : > { %v484_v48 = vrot.slane %v483_v47, 4 }
 0x24a   : > { %v485_v49 = vadd.f32 %v484_v48, %v483_v47 }
 0x24b   : > { %v511_v50 = vpop.xlane.xlu1 %510 }
 0x24c   : > { %v486_v51 = vrot.slane %v485_v49, 2  ;;  %v512_v52 = vrot.slane %v511_v50, 4 }
 0x24e   : > { %v487_v53 = vadd.f32 %v486_v51, %v485_v49  ;;  %v513_v54 = vadd.f32 %v512_v52, %v511_v50 }
 0x24f   : > { %v540_v6 = vpop.permute.xlu1 %539 }
 0x250   : > { %v488_v55 = vrot.slane %v487_v53, 1  ;;  %v514_v56 = vrot.slane %v513_v54, 2 }
 0x252   : > { %v489_v57 = vadd.f32 %v488_v55, %v487_v53  ;;  %v515_v58 = vadd.f32 %v514_v56, %v513_v54 }
 0x253   : > { %v545_v16 = vpop.permute.xlu1 %544 }
 0x254   : > { %v490_v59 = vmul.f32 0.00048828125, %v489_v57  ;;  %v516_v60 = vrot.slane %v515_v58, 1  ;;  %v757_v57 = vld [vmem:[%s1941_s2] sm:$0xff] }
 0x256   : > { %v491_v61 = vadd.f32 1e-05, %v490_v59  ;;  %v517_v62 = vadd.f32 %v516_v60, %v515_v58 }
 0x258   : > { %1464 = vrsqrt.f32 %v491_v61  ;;  %v518_v63 = vmul.f32 0.00048828125, %v517_v62 }
 0x25a   : > { %v519_v1 = vadd.f32 1e-05, %v518_v63 }
 0x25c   : > { %1466 = vrsqrt.f32 %v519_v1 }
 0x262   : > { %v1465_v2 = vpop.eup %1464 }
 0x263   : > { %v493_v4 = vmul.f32 %v1465_v2, %v477_v33  ;;  %v494_v5 = vmul.f32 %v1465_v2, %v478_v34  ;;  %v758_v33 = vld [vmem:[%s1941_s2 + $0x8] sm:$0xff]  ;;  %v563_v34 = vlaneseq }
 0x264   : > { %1250 = vmatprep.mubr.msk.f32.mxu1 %vm379_vm0, %v758_v33 }
 0x265   : > { %v533_v7 = vmul.f32 %v526_v3, %v493_v4  ;;  %v534_v8 = vmul.f32 %v526_v3, %v494_v5  ;;  %v564_v35 = vand.u32 127, %v563_v34 }
 0x266   : > { %v1467_v9 = vpop.eup %1466 }
 0x267   : > { %v521_v10 = vmul.f32 %v1467_v9, %v505_v39  ;;  %v522_v11 = vmul.f32 %v1467_v9, %v506_v40  ;;  %v547_v12 = vadd.f32 %v540_v6, %v533_v7  ;;  %v548_v13 = vadd.f32 %v540_v6, %v534_v8 }
 0x268   : > { %v565_v37 = vadd.s32 128, %v564_v35  ;;  %v570_v40 = vand.u32 15, %v564_v35 }
 0x269   : > { %v535_v14 = vmul.f32 %v531_v46, %v521_v10  ;;  %v536_v15 = vmul.f32 %v531_v46, %v522_v11  ;;  %vm551_vm1 = vcmp.ge.f32.partialorder %v547_v12, 0.0  ;;  %vm552_vm2 = vcmp.ge.f32.partialorder %v548_v13, 0.0 }
 0x26a   : > { %v555_v17 = vmul.f32 0.2, %v547_v12  ;;  %v556_v18 = vmul.f32 0.2, %v548_v13  ;;  %v577_v39 = vand.u32 15, %v565_v37  ;;  %vm611_vm7 = vcmp.ge.s32.totalorder %v570_v40, 1 }
 0x26b   : > { %v549_v19 = vadd.f32 %v545_v16, %v535_v14  ;;  %v550_v20 = vadd.f32 %v545_v16, %v536_v15  ;;  %vm1777_vm9 = vmpackc.low %vm611_vm7, %vm611_vm7  ;;  %vm650_vm14 = vcmp.le.s32.totalorder %v570_v40, 14 }
 0x26c   : > { %v1747_v21 = vsel %vm551_vm1, %v547_v12, %v555_v17  ;;  %v1749_v22 = vsel %vm552_vm2, %v548_v13, %v556_v18  ;;  %vm612_vm6 = vcmp.ge.s32.totalorder %v577_v39, 1  ;;  %vm651_vm13 = vcmp.le.s32.totalorder %v577_v39, 14  ;;  %vm1803_vm2 = vmpackc.low %vm650_vm14, %vm650_vm14 }
 0x26d   : > { %vm553_vm3 = vcmp.ge.f32.partialorder %v549_v19, 0.0  ;;  %vm554_vm4 = vcmp.ge.f32.partialorder %v550_v20, 0.0  ;;  %v557_v23 = vmul.f32 0.2, %v549_v19  ;;  %v558_v24 = vmul.f32 0.2, %v550_v20  ;;  %vm1773_vm8 = vmpackc.low %vm612_vm6, %vm612_vm6 }
 0x26e   : > { %v1384_v25 = vpack.i.bf16 %v1749_v22, %v1747_v21  ;;  %vm1799_vm15 = vmpackc.low %vm651_vm13, %vm651_vm13  ;;  %vm664_vm1 = vcmask 7168   ;;  %vm727_vm6 = vcmask 916480  }
 0x26f   : > { %v1753_v26 = vsel %vm553_vm3, %v549_v19, %v557_v23  ;;  %v1755_v27 = vsel %vm554_vm4, %v550_v20, %v558_v24  ;;  %vm685_vm3 = vcmask 1039360   ;;  %vm706_vm4 = vcmask 924672   ;;  %vm1305_vm7 = vmpackc.low %vm727_vm6, %vm727_vm6 }
 0x270   : > { %1385 = vrot.lane.b32.xlu1 %v1384_v25, %s1577_s20  ;;  %v1414_v28 = vpack.i.bf16 %v1755_v27, %v1753_v26  ;;  %v1288_v29 = vpack.c.bf16 %v1755_v27, %v1749_v22  ;;  %v1290_v30 = vpack.c.bf16 %v1753_v26, %v1747_v21  ;;  %v1429_v31 = vpack.i.bf16 %v1753_v26, %v1747_v21 }
 0x271   : > { %v1424_v32 = vpack.i.bf16 %v1755_v27, %v1749_v22 }
 0x272   : > { %1415 = vrot.lane.b32.xlu0 %v1414_v28, %s1578_s21 }
 0x274   : > { %1390 = vrot.lane.b32.xlu1 %v1384_v25, %s1953_s27 }
 0x276   : > { %1420 = vrot.lane.b32.xlu0 %v1414_v28, %s1580_s25 }
 0x278   : > { %1395 = vrot.lane.b32.xlu1 %v1414_v28, %s1577_s20 }
 0x27a   : > { %1430 = vrot.lane.b32.xlu0 %v1429_v31, %s1581_s26 }
 0x27c   : > { %1400 = vrot.lane.b32.xlu1 %v1414_v28, %s1953_s27 }
 0x27e   : > { %1445 = vrot.lane.b32.xlu0 %v1429_v31, %s1582_s29 }
 0x280   : > { %1405 = vrot.lane.b32.xlu1 %v1384_v25, %s1578_s21 }
 0x282   : > { %1450 = vrot.lane.b32.xlu0 %v1414_v28, %s1583_s30 }
 0x284   : > { %1410 = vrot.lane.b32.xlu1 %v1384_v25, %s1580_s25  ;;  %s1895_s25 = scalar_lea.hbm %s1949_s10, %s1260_s11 }
 0x286   : > { %1460 = vrot.lane.b32.xlu0 %v1429_v31, %s1584_s12 }
 0x288   : > { %1425 = vrot.lane.b32.xlu1 %v1424_v32, %s1581_s26 }
 0x28c   : > { %1435 = vrot.lane.b32.xlu1 %v1424_v32, %s1582_s29  ;;  %s1585_s29 = smov [#allocation5]  }
 0x290   : > { %1440 = vrot.lane.b32.xlu1 %v1384_v25, %s1583_s30  ;;  %s365_s30 = sand.u32 1, %s1562_s14  }
 0x291   : > { %s1897_s17 = scalar_lea.sflag [#allocation4], %s365_s30 }
 0x294   : > { %1455 = vrot.lane.b32.xlu1 %v1424_v32, %s1584_s12  ;;  %s1215_s12 = sshll.u32 %s365_s30, 5 }
 0x295   : > { %s367_s18 = scalar_lea.vmem [#allocation5], %s1215_s12  ;;  %s1508_s12 = sshll.u32 %s1585_s29, 4  ;;  %s1509_s12 = int_to_ptr.vmem [resolvable:$false] %s1508_s12 }
 0x296   : > { %s1135_s28 = sshll.u32 %s367_s18, 4  ;;  %s1510_s27 = scalar_lea.vmem %s1509_s12, 1024  ;;  %s1890_s28 = int_to_ptr.vmem [resolvable:$true] %s1135_s28 }
 0x297   : > { %s1504_s26 = scalar_lea.vmem %s1890_s28, 512  ;;  %p1511_p2 = scmp.lt.s32.totalorder %s1890_s28, %s1509_s12 }
 0x298   : > { %p1505_p6 = scmp.ne.s32.totalorder %s1890_s28, %s1504_s26  ;;  %p1512_p3 = scmp.lt.s32.totalorder %s1510_s27, %s1504_s26 }
 0x29a   : > { %p1506_p10 = pnand %p1505_p6, %p1971_p9  ;;  %p1513_p4 = por %p1512_p3, %p1511_p2 }
 0x29c   : > { %p1507_p12 = pneg %p1506_p10 }
 0x29e   : > { %p1514_p7 = pnand %p1513_p4, %p1507_p12 }
 0x2e2   : > { %v1386_v36 = vpop.permute.xlu1 %1385 }
 0x2e3   : > { %v1388_v41 = vunpack.i.h.bf16 %v1386_v36  ;;  %v1387_v42 = vunpack.i.l.bf16 %v1386_v36 }
 0x2e4   : > { %v1416_v43 = vpop.permute.xlu0 %1415 }
 0x2e5   : > { %v609_v47 = vsel %vm602_vm5, 0.0, %v1387_v42  ;;  %v603_v48 = vsel %vm602_vm5, %v1387_v42, %v1388_v41  ;;  %v1418_v62 = vunpack.i.h.bf16 %v1416_v43  ;;  %v1417_v63 = vunpack.i.l.bf16 %v1416_v43 }
 0x2e6   : > { %v1391_v38 = vpop.permute.xlu1 %1390 }
 0x2e7   : > { %v1393_v49 = vunpack.i.h.bf16 %v1391_v38  ;;  %v1392_v50 = vunpack.i.l.bf16 %v1391_v38  ;;  %v643_v8 = vsel %vm641_vm11, %v1417_v63, %v1418_v62  ;;  %v649_v9 = vsel %vm641_vm11, 0.0, %v1417_v63 }
 0x2e8   : > { %v1421_v58 = vpop.permute.xlu0 %1420 }
 0x2e9   : > { %v625_v1 = vsel %vm379_vm0, %v1392_v50, %v1393_v49  ;;  %v1423_v10 = vunpack.i.h.bf16 %v1421_v58  ;;  %v1422_v11 = vunpack.i.l.bf16 %v1421_v58 }
 0x2ea   : > { %v1396_v44 = vpop.permute.xlu1 %1395 }
 0x2eb   : > { %v1398_v45 = vunpack.i.h.bf16 %v1396_v44  ;;  %v1397_v46 = vunpack.i.l.bf16 %v1396_v44  ;;  %v666_v24 = vsel %vm664_vm1, %v1422_v11, %v1423_v10  ;;  %v672_v25 = vsel %vm664_vm1, 0.0, %v1422_v11  ;;  %v760_v11 = vld [vmem:[%s1941_s2 + $0x18] sm:$0xff] }
 0x2ec   : > { %v1431_v12 = vpop.permute.xlu0 %1430 }
 0x2ed   : > { %v610_v51 = vsel %vm602_vm5, 0.0, %v1397_v46  ;;  %v604_v52 = vsel %vm602_vm5, %v1397_v46, %v1398_v45  ;;  %v1433_v40 = vunpack.i.h.bf16 %v1431_v12  ;;  %v1432_v41 = vunpack.i.l.bf16 %v1431_v12  ;;  %v759_v12 = vld [vmem:[%s1941_s2 + $0x10] sm:$0xff] }
 0x2ee   : > { %v1401_v54 = vpop.permute.xlu1 %1400  ;;  %v1265_v55 = vpack.c.bf16 %v604_v52, %v603_v48  ;;  %v1268_v56 = vpack.c.bf16 %v610_v51, %v609_v47  ;;  %vm744_vm5 = vcmask 908288  }
 0x2ef   : > { %v1403_v59 = vunpack.i.h.bf16 %v1401_v54  ;;  %v1402_v60 = vunpack.i.l.bf16 %v1401_v54 }
 0x2f0   : > { %1267 = vmatprep.subr.msk.bf16.mxu1 %vm1773_vm8, %v1265_v55  ;;  %v1446_v35 = vpop.permute.xlu0 %1445 }
 0x2f1   : > { %1270 = vmatpush1.bf16.msk.msra.mxu1 %vm1777_vm9, %v1268_v56  ;;  %v626_v2 = vsel %vm379_vm0, %v1402_v60, %v1403_v59  ;;  %v1273_v5 = vpack.c.bf16 %v1402_v60, %v1392_v50  ;;  %v1447_v48 = vunpack.i.l.bf16 %v1446_v35  ;;  %v1448_v52 = vunpack.i.h.bf16 %v1446_v35 }
 0x2f2   : > { %v1406_v3 = vpop.permute.xlu1 %1405  ;;  %v1271_v4 = vpack.c.bf16 %v626_v2, %v625_v1 }
 0x2f3   : > { %v1408_v6 = vunpack.i.h.bf16 %v1406_v3  ;;  %v1407_v7 = vunpack.i.l.bf16 %v1406_v3 }
 0x2f4   : > { %1272 = vmatprep.subr.bf16.mxu1 %v1271_v4  ;;  %v1451_v49 = vpop.permute.xlu0 %1450 }
 0x2f5   : > { %v642_v13 = vsel %vm641_vm11, %v1407_v7, %v1408_v6  ;;  %v648_v14 = vsel %vm641_vm11, 0.0, %v1407_v7  ;;  %1275 = vmatpush1.bf16.msk.msra.mxu1 %vm1274_vm12, %v1273_v5  ;;  %v1453_v59 = vunpack.i.h.bf16 %v1451_v49  ;;  %v1452_v60 = vunpack.i.l.bf16 %v1451_v49 }
 0x2f6   : > { %v1276_v16 = vpack.c.bf16 %v643_v8, %v642_v13  ;;  %v1279_v17 = vpack.c.bf16 %v649_v9, %v648_v14  ;;  %v1411_v18 = vpop.permute.xlu1 %1410 }
 0x2f7   : > { %v1413_v20 = vunpack.i.h.bf16 %v1411_v18  ;;  %v1412_v23 = vunpack.i.l.bf16 %v1411_v18  ;;  %v729_v53 = vsel %vm727_vm6, %v1452_v60, %v1453_v59 }
 0x2f8   : > { %1278 = vmatprep.subr.msk.bf16.mxu1 %vm1799_vm15, %v1276_v16  ;;  %v1461_v26 = vpop.permute.xlu0 %1460 }
 0x2f9   : > { %v665_v28 = vsel %vm664_vm1, %v1412_v23, %v1413_v20  ;;  %v671_v31 = vsel %vm664_vm1, 0.0, %v1412_v23  ;;  %1281 = vmatpush1.bf16.msk.msra.mxu1 %vm1803_vm2, %v1279_v17  ;;  %v1463_v4 = vunpack.i.h.bf16 %v1461_v26  ;;  %v1462_v5 = vunpack.i.l.bf16 %v1461_v26 }
 0x2fa   : > { %v1282_v32 = vpack.c.bf16 %v666_v24, %v665_v28  ;;  %v1285_v33 = vpack.c.bf16 %v672_v25, %v671_v31  ;;  %v1426_v34 = vpop.permute.xlu1 %1425 }
 0x2fb   : > { %v1428_v36 = vunpack.i.h.bf16 %v1426_v34  ;;  %v1427_v37 = vunpack.i.l.bf16 %v1426_v34 }
 0x2fc   : > { %1284 = vmatprep.subr.msk.bf16.mxu1 %vm1773_vm8, %v1282_v32 }
 0x2fd   : > { %v693_v38 = vsel %vm685_vm3, %v1428_v36, 0.0  ;;  %v692_v39 = vsel %vm685_vm3, %v1427_v37, 0.0  ;;  %1287 = vmatpush1.bf16.msk.msra.mxu1 %vm1777_vm9, %v1285_v33  ;;  %v686_v45 = vsel %vm685_vm3, %v1432_v41, %v1427_v37  ;;  %v687_v46 = vsel %vm685_vm3, %v1433_v40, %v1428_v36 }
 0x2fe   : > { %v1436_v42 = vpop.permute.xlu1 %1435  ;;  %1289 = vmatprep.subr.bf16.mxu1 %v1288_v29  ;;  %v1292_v47 = vpack.c.bf16 %v693_v38, %v692_v39  ;;  %v1295_v27 = vpack.c.bf16 %v687_v46, %v686_v45 }
 0x2ff   : > { %v1438_v43 = vunpack.i.h.bf16 %v1436_v42  ;;  %v1437_v44 = vunpack.i.l.bf16 %v1436_v42 }
 0x301   : > { %v714_v50 = vsel %vm706_vm4, %v1438_v43, 0.0  ;;  %v713_v51 = vsel %vm706_vm4, %v1437_v44, 0.0  ;;  %1291 = vmatpush1.bf16.msra.mxu1 %v1290_v30  ;;  %v707_v29 = vsel %vm706_vm4, %v1447_v48, %v1437_v44  ;;  %v708_v54 = vsel %vm706_vm4, %v1448_v52, %v1438_v43  ;;  %v844_v52 = vld [vmem:[%s1945_s6] sm:$0xff] }
 0x302   : > { %v1441_v22 = vpop.permute.xlu1 %1440  ;;  %1294 = vmatprep.subr.msk.bf16.mxu1 %vm1799_vm15, %v1292_v47  ;;  %v1298_v55 = vpack.c.bf16 %v714_v50, %v713_v51  ;;  %v1301_v30 = vpack.c.bf16 %v708_v54, %v707_v29  ;;  %v845_v51 = vld [vmem:[%s1945_s6 + $0x8] sm:$0xff] }
 0x303   : > { %v1443_v56 = vunpack.i.h.bf16 %v1441_v22  ;;  %v1442_v58 = vunpack.i.l.bf16 %v1441_v22  ;;  %v846_v22 = vld [vmem:[%s1946_s7] sm:$0xff] }
 0x305   : > { %1297 = vmatpush1.bf16.msk.msra.mxu1 %vm1803_vm2, %v1295_v27  ;;  %v1304_v63 = vpack.c.bf16 %v1453_v59, %v1443_v56  ;;  %v728_v1 = vsel %vm727_vm6, %v1442_v58, %v1443_v56  ;;  %v847_v27 = vld [vmem:[%s1946_s7 + $0x8] sm:$0xff] }
 0x306   : > { %v1456_v21 = vpop.permute.xlu1 %1455  ;;  %1300 = vmatprep.subr.msk.bf16.mxu1 %vm1773_vm8, %v1298_v55  ;;  %v1307_v6 = vpack.c.bf16 %v729_v53, %v728_v1 }
 0x307   : > { %v1458_v61 = vunpack.i.h.bf16 %v1456_v21  ;;  %v1457_v62 = vunpack.i.l.bf16 %v1456_v21 }
 0x309   : > { %v752_v2 = vsel %vm744_vm5, %v1458_v61, 0.0  ;;  %v751_v3 = vsel %vm744_vm5, %v1457_v62, 0.0  ;;  %1303 = vmatpush1.bf16.msk.msra.mxu1 %vm1777_vm9, %v1301_v30  ;;  %v745_v7 = vsel %vm744_vm5, %v1462_v5, %v1457_v62  ;;  %v746_v8 = vsel %vm744_vm5, %v1463_v4, %v1458_v61 }
 0x30a   : > { %1306 = vmatprep.subr.msk.bf16.mxu1 %vm1305_vm7, %v1304_v63  ;;  %v1309_v9 = vpack.c.bf16 %v752_v2, %v751_v3  ;;  %v1312_v10 = vpack.c.bf16 %v746_v8, %v745_v7 }
 0x30d   : > { %1308 = vmatpush1.bf16.msra.mxu1 %v1307_v6 }
 0x30e   : > { %1311 = vmatprep.subr.msk.bf16.mxu1 %vm1799_vm15, %v1309_v9 }
 0x311   : > { %1314 = vmatpush1.bf16.msk.msra.mxu1 %vm1803_vm2, %v1312_v10 }
 0x314   : > { %832 = vmatmul.mubr.f32.vlgmr.msra.gmra.mrb[0].mxu1 %v757_v57 }
 0x315   : > { %1251 = vmatprep.mubr.msk.f32.mxu1 %vm379_vm0, %v760_v11 }
 0x318   : > { %838 = vmatmul.mubr.f32.gmra.mrb[2].mxu1 %v759_v12 }
 0x3e7   : > { %v833_v13 = vpop.f32.mrb[0].mxu1 }
 0x3e8   : > { %v835_v14 = vpop.f32.mrb[1].mxu1 }
 0x3e9   : > { %v848_v15 = vadd.f32 %v835_v14, %v833_v13 }
 0x3eb   : > { %849 = vadd.xlane.f32.xlu1 %v848_v15  ;;  %v839_v16 = vpop.f32.mrb[2].mxu1 }
 0x3ec   : > { %v841_v17 = vpop.f32.mrb[3].mxu1 }
 0x3ed   : > { %v876_v18 = vadd.f32 %v841_v17, %v839_v16 }
 0x3ef   : > { %877 = vadd.xlane.f32.xlu0 %v876_v18 }
 0x478   : > { %v850_v19 = vpop.xlane.xlu1 %849 }
 0x479   : > { %v851_v20 = vrot.slane %v850_v19, 4 }
 0x47b   : > { %v852_v23 = vadd.f32 %v851_v20, %v850_v19 }
 0x47c   : > { %v878_v24 = vpop.xlane.xlu0 %877 }
 0x47d   : > { %v853_v25 = vrot.slane %v852_v23, 2  ;;  %v879_v28 = vrot.slane %v878_v24, 4 }
 0x47f   : > { %v854_v31 = vadd.f32 %v853_v25, %v852_v23  ;;  %v880_v32 = vadd.f32 %v879_v28, %v878_v24 }
 0x481   : > { %v855_v33 = vrot.slane %v854_v31, 1  ;;  %v881_v34 = vrot.slane %v880_v32, 2 }
 0x483   : > { %v856_v35 = vadd.f32 %v855_v33, %v854_v31  ;;  %v882_v36 = vadd.f32 %v881_v34, %v880_v32 }
 0x485   : > { %v857_v37 = vmul.f32 0.00048828125, %v856_v35  ;;  %v883_v38 = vrot.slane %v882_v36, 1 }
 0x487   : > { %v884_v39 = vadd.f32 %v883_v38, %v882_v36  ;;  %v858_v40 = vsub.f32 %v833_v13, %v857_v37  ;;  %v859_v41 = vsub.f32 %v835_v14, %v857_v37  ;;  %v944_v38 = vld [vmem:[%s1942_s3] sm:$0xff] }
 0x489   : > { %v885_v42 = vmul.f32 0.00048828125, %v884_v39  ;;  %v860_v43 = vmul.f32 %v858_v40, %v858_v40  ;;  %v861_v44 = vmul.f32 %v859_v41, %v859_v41  ;;  %v945_v39 = vld [vmem:[%s1942_s3 + $0x8] sm:$0xff] }
 0x48b   : > { %v862_v45 = vadd.f32 %v861_v44, %v860_v43  ;;  %v886_v46 = vsub.f32 %v839_v16, %v885_v42  ;;  %v887_v47 = vsub.f32 %v841_v17, %v885_v42 }
 0x48d   : > { %863 = vadd.xlane.f32.xlu0 %v862_v45  ;;  %v888_v48 = vmul.f32 %v886_v46, %v886_v46  ;;  %v889_v49 = vmul.f32 %v887_v47, %v887_v47 }
 0x48f   : > { %v890_v50 = vadd.f32 %v889_v49, %v888_v48 }
 0x491   : > { %891 = vadd.xlane.f32.xlu1 %v890_v50 }
 0x4a2   : > { %911 = vperm.xlu1 %1383, %v845_v51  }
 0x4a3   : > { %906 = vperm.xlu0 %1382, %v844_v52  }
 0x4a6   : > { %920 = vperm.xlu1 %1383, %v846_v22  }
 0x4a7   : > { %925 = vperm.xlu0 %1382, %v847_v27  }
 0x51a   : > { %v864_v29 = vpop.xlane.xlu0 %863 }
 0x51b   : > { %v865_v54 = vrot.slane %v864_v29, 4 }
 0x51d   : > { %v866_v55 = vadd.f32 %v865_v54, %v864_v29 }
 0x51e   : > { %v892_v56 = vpop.xlane.xlu1 %891 }
 0x51f   : > { %v867_v58 = vrot.slane %v866_v55, 2  ;;  %v893_v59 = vrot.slane %v892_v56, 4 }
 0x521   : > { %v868_v60 = vadd.f32 %v867_v58, %v866_v55  ;;  %v894_v21 = vadd.f32 %v893_v59, %v892_v56 }
 0x522   : > { %v912_v53 = vpop.permute.xlu1 %911  ;;  %v907_v9 = vpop.permute.xlu0 %906 }
 0x523   : > { %v869_v26 = vrot.slane %v868_v60, 1  ;;  %v895_v30 = vrot.slane %v894_v21, 2 }
 0x525   : > { %v870_v61 = vadd.f32 %v869_v26, %v868_v60  ;;  %v896_v62 = vadd.f32 %v895_v30, %v894_v21 }
 0x526   : > { %v921_v12 = vpop.permute.xlu1 %920  ;;  %v926_v19 = vpop.permute.xlu0 %925 }
 0x527   : > { %v871_v63 = vmul.f32 0.00048828125, %v870_v61  ;;  %v897_v1 = vrot.slane %v896_v62, 1 }
 0x529   : > { %v872_v2 = vadd.f32 1e-05, %v871_v63  ;;  %v898_v3 = vadd.f32 %v897_v1, %v896_v62 }
 0x52b   : > { %1468 = vrsqrt.f32 %v872_v2  ;;  %v899_v4 = vmul.f32 0.00048828125, %v898_v3 }
 0x52d   : > { %v900_v5 = vadd.f32 1e-05, %v899_v4  ;;  %v1030_v4 = vld [vmem:[%s1947_s8 + $0x8] sm:$0xff] }
 0x52f   : > { %1470 = vrsqrt.f32 %v900_v5  ;;  %v1029_v5 = vld [vmem:[%s1947_s8] sm:$0xff] }
 0x535   : > { %v1469_v6 = vpop.eup %1468 }
 0x536   : > { %v874_v7 = vmul.f32 %v1469_v6, %v858_v40  ;;  %v875_v8 = vmul.f32 %v1469_v6, %v859_v41  ;;  %v1032_v6 = vld [vmem:[%s1948_s9 + $0x8] sm:$0xff] }
 0x538   : > { %v914_v10 = vmul.f32 %v907_v9, %v874_v7  ;;  %v915_v57 = vmul.f32 %v907_v9, %v875_v8 }
 0x539   : > { %v1471_v11 = vpop.eup %1470 }
 0x53a   : > { %v902_v13 = vmul.f32 %v1471_v11, %v886_v46  ;;  %v903_v14 = vmul.f32 %v1471_v11, %v887_v47  ;;  %v928_v15 = vadd.f32 %v921_v12, %v914_v10  ;;  %v929_v16 = vadd.f32 %v921_v12, %v915_v57 }
 0x53c   : > { %v916_v17 = vmul.f32 %v912_v53, %v902_v13  ;;  %v917_v18 = vmul.f32 %v912_v53, %v903_v14  ;;  %v936_v20 = vmul.f32 0.2, %v928_v15  ;;  %v937_v23 = vmul.f32 0.2, %v929_v16  ;;  %v1031_v53 = vld [vmem:[%s1948_s9] sm:$0xff] }
 0x53d   : > { %vm932_vm8 = vcmp.ge.f32.partialorder %v928_v15, 0.0  ;;  %vm933_vm9 = vcmp.ge.f32.partialorder %v929_v16, 0.0 }
 0x53e   : > { %v930_v24 = vadd.f32 %v926_v19, %v916_v17  ;;  %v931_v25 = vadd.f32 %v926_v19, %v917_v18  ;;  %v940_v32 = vsel %vm932_vm8, %v928_v15, %v936_v20  ;;  %v941_v34 = vsel %vm933_vm9, %v929_v16, %v937_v23 }
 0x540   : > { %vm934_vm10 = vcmp.ge.f32.partialorder %v930_v24, 0.0  ;;  %vm935_vm11 = vcmp.ge.f32.partialorder %v931_v25, 0.0  ;;  %v938_v28 = vmul.f32 0.2, %v930_v24  ;;  %v939_v31 = vmul.f32 0.2, %v931_v25 }
 0x542   : > { %v942_v33 = vsel %vm934_vm10, %v930_v24, %v938_v28  ;;  %v943_v35 = vsel %vm935_vm11, %v931_v25, %v939_v31 }
 0x543   : > { %v1317_v36 = vpack.c.bf16 %v942_v33, %v940_v32  ;;  %v1315_v37 = vpack.c.bf16 %v943_v35, %v941_v34 }
 0x545   : > { %1316 = vmatprep.subr.bf16.mxu0 %v1315_v37 }
 0x546   : > { %1318 = vmatpush1.bf16.msra.mxu0 %v1317_v36 }
 0x549   : > { %1252 = vmatmul.mubr.msk.f32.vlgmr.msra.gmra.mrb[4].mxu0 %vm379_vm0, %v944_v38 }
 0x54a   : > { %1022 = vmatprep.mubr.f32.mxu0 %v1575_v0 }
 0x54d   : > { %1253 = vmatmul.mubr.msk.f32.gmra.mrb[6].mxu0 %vm379_vm0, %v945_v39 }
 0x61c   : > { %v1018_v40 = vpop.f32.mrb[4].mxu0 }
 0x61d   : > { %v1020_v41 = vpop.f32.mrb[5].mxu0 }
 0x61e   : > { %v1033_v42 = vadd.f32 %v1020_v41, %v1018_v40 }
 0x620   : > { %1034 = vadd.xlane.f32.xlu1 %v1033_v42  ;;  %v1024_v43 = vpop.f32.mrb[6].mxu0 }
 0x621   : > { %v1026_v44 = vpop.f32.mrb[7].mxu0 }
 0x622   : > { %v1061_v45 = vadd.f32 %v1026_v44, %v1024_v43 }
 0x624   : > { %1062 = vadd.xlane.f32.xlu0 %v1061_v45 }
 0x6ad   : > { %v1035_v46 = vpop.xlane.xlu1 %1034 }
 0x6ae   : > { %v1036_v47 = vrot.slane %v1035_v46, 4 }
 0x6b0   : > { %v1037_v48 = vadd.f32 %v1036_v47, %v1035_v46 }
 0x6b1   : > { %v1063_v49 = vpop.xlane.xlu0 %1062 }
 0x6b2   : > { %v1038_v50 = vrot.slane %v1037_v48, 2  ;;  %v1064_v0 = vrot.slane %v1063_v49, 4 }
 0x6b4   : > { %v1039_v51 = vadd.f32 %v1038_v50, %v1037_v48  ;;  %v1065_v52 = vadd.f32 %v1064_v0, %v1063_v49 }
 0x6b6   : > { %v1040_v22 = vrot.slane %v1039_v51, 1  ;;  %v1066_v27 = vrot.slane %v1065_v52, 2 }
 0x6b8   : > { %v1041_v29 = vadd.f32 %v1040_v22, %v1039_v51  ;;  %v1067_v54 = vadd.f32 %v1066_v27, %v1065_v52 }
 0x6ba   : > { %v1042_v55 = vmul.f32 0.00048828125, %v1041_v29  ;;  %v1068_v56 = vrot.slane %v1067_v54, 1 }
 0x6bc   : > { %v1069_v58 = vadd.f32 %v1068_v56, %v1067_v54  ;;  %v1043_v59 = vsub.f32 %v1018_v40, %v1042_v55  ;;  %v1044_v60 = vsub.f32 %v1020_v41, %v1042_v55 }
 0x6be   : > { %v1070_v21 = vmul.f32 0.00048828125, %v1069_v58  ;;  %v1045_v26 = vmul.f32 %v1043_v59, %v1043_v59  ;;  %v1046_v30 = vmul.f32 %v1044_v60, %v1044_v60 }
 0x6c0   : > { %v1047_v61 = vadd.f32 %v1046_v30, %v1045_v26  ;;  %v1071_v62 = vsub.f32 %v1024_v43, %v1070_v21  ;;  %v1072_v63 = vsub.f32 %v1026_v44, %v1070_v21 }
 0x6c2   : > { %1048 = vadd.xlane.f32.xlu0 %v1047_v61  ;;  %v1073_v1 = vmul.f32 %v1071_v62, %v1071_v62  ;;  %v1074_v2 = vmul.f32 %v1072_v63, %v1072_v63 }
 0x6c4   : > { %v1075_v3 = vadd.f32 %v1074_v2, %v1073_v1 }
 0x6c6   : > { %1076 = vadd.xlane.f32.xlu1 %v1075_v3 }
 0x6d7   : > { %1096 = vperm.xlu1 %1383, %v1030_v4  }
 0x6d8   : > { %1091 = vperm.xlu0 %1382, %v1029_v5  }
 0x6db   : > { %1105 = vperm.xlu1 %1383, %v1031_v53  }
 0x6dc   : > { %1110 = vperm.xlu0 %1382, %v1032_v6  }
 0x74f   : > { %v1049_v7 = vpop.xlane.xlu0 %1048 }
 0x750   : > { %v1050_v8 = vrot.slane %v1049_v7, 4 }
 0x752   : > { %v1051_v9 = vadd.f32 %v1050_v8, %v1049_v7 }
 0x753   : > { %v1077_v10 = vpop.xlane.xlu1 %1076 }
 0x754   : > { %v1052_v57 = vrot.slane %v1051_v9, 2  ;;  %v1078_v11 = vrot.slane %v1077_v10, 4 }
 0x756   : > { %v1053_v12 = vadd.f32 %v1052_v57, %v1051_v9  ;;  %v1079_v13 = vadd.f32 %v1078_v11, %v1077_v10 }
 0x757   : > { %v1097_v28 = vpop.permute.xlu1 %1096  ;;  %v1092_v34 = vpop.permute.xlu0 %1091 }
 0x758   : > { %v1054_v14 = vrot.slane %v1053_v12, 1  ;;  %v1080_v15 = vrot.slane %v1079_v13, 2 }
 0x75a   : > { %v1055_v16 = vadd.f32 %v1054_v14, %v1053_v12  ;;  %v1081_v17 = vadd.f32 %v1080_v15, %v1079_v13 }
 0x75b   : > { %v1106_v38 = vpop.permute.xlu1 %1105  ;;  %v1111_v45 = vpop.permute.xlu0 %1110 }
 0x75c   : > { %v1056_v18 = vmul.f32 0.00048828125, %v1055_v16  ;;  %v1082_v19 = vrot.slane %v1081_v17, 1 }
 0x75e   : > { %v1057_v20 = vadd.f32 1e-05, %v1056_v18  ;;  %v1083_v23 = vadd.f32 %v1082_v19, %v1081_v17 }
 0x760   : > { %1472 = vrsqrt.f32 %v1057_v20  ;;  %v1084_v24 = vmul.f32 0.00048828125, %v1083_v23 }
 0x762   : > { %v1085_v25 = vadd.f32 1e-05, %v1084_v24 }
 0x764   : > { %1474 = vrsqrt.f32 %v1085_v25 }
 0x76a   : > { %v1473_v31 = vpop.eup %1472 }
 0x76b   : > { %v1059_v32 = vmul.f32 %v1473_v31, %v1043_v59  ;;  %v1060_v33 = vmul.f32 %v1473_v31, %v1044_v60 }
 0x76d   : > { %v1099_v35 = vmul.f32 %v1092_v34, %v1059_v32  ;;  %v1100_v36 = vmul.f32 %v1092_v34, %v1060_v33 }
 0x76e   : > { %v1475_v37 = vpop.eup %1474 }
 0x76f   : > { %v1087_v39 = vmul.f32 %v1475_v37, %v1071_v62  ;;  %v1088_v40 = vmul.f32 %v1475_v37, %v1072_v63  ;;  %v1113_v41 = vadd.f32 %v1106_v38, %v1099_v35  ;;  %v1114_v42 = vadd.f32 %v1106_v38, %v1100_v36 }
 0x771   : > { %v1101_v43 = vmul.f32 %v1097_v28, %v1087_v39  ;;  %v1102_v44 = vmul.f32 %v1097_v28, %v1088_v40  ;;  %1117 = vst [vmem:[%s367_s18] sm:$0xff] %v1113_v41  ;;  %1118 = vst [vmem:[%s367_s18 + $0x8] sm:$0xff] %v1114_v42 }
 0x773   : > { %v1115_v46 = vadd.f32 %v1111_v45, %v1101_v43  ;;  %v1116_v47 = vadd.f32 %v1111_v45, %v1102_v44 }
 0x775   : > { %1119 = vst [vmem:[%s367_s18 + $0x10] sm:$0xff] %v1115_v46  ;;  %1120 = vst [vmem:[%s367_s18 + $0x18] sm:$0xff] %v1116_v47 }
 0x776   : > { %1517 = shalt.err (!%p1514_p7)
}
 0x777   : > { %s1518_s30 = scalar_lea.hbm %s1895_s25, 512  ;;  %s1522_s20 = scalar_lea.hbm %s1949_s10, 1024 }
 0x778   : > { %p1519_p8 = scmp.ne.s32.totalorder %s1895_s25, %s1518_s30  ;;  %p1523_p1 = scmp.lt.u32.totalorder %s1895_s25, %s1949_s10 }
 0x779   : > { %p1524_p0 = scmp.lt.u32.totalorder %s1522_s20, %s1518_s30  ;;  %p1526_p6 = scmp.lt.u32.totalorder %s1518_s30, %s1895_s25 }
 0x77a   : > { %p1520_p11 = pnand %p1519_p8, %p1971_p9 }
 0x77b   : > { %p1525_p5 = por %p1524_p0, %p1523_p1 }
 0x77c   : > { %p1521_p13 = pneg %p1520_p11 }
 0x77d   : > { %p1527_p10 = por %p1526_p6, %p1525_p5 }
 0x77f   : > { %p1528_p12 = pnand %p1527_p10, %p1521_p13 }
 0x781   : > { %1531 = shalt.err (!%p1528_p12)
}
 0x782   : > { %s1586_s27 = smov 256   ;;  %s1972_s26 = smov 16  }
 0x783   : > { %1323 = dma.vmem_to_hbm [thread:$0]  (%p1971_p9), %s1890_s28, 512, %s1895_s25, %s1897_s17, %s1586_s27, %s1586_s27, %s1972_s26  }
 0x784 PF: > { %p1335_p2 = scmp.ge.s32.totalorder %s1570_s16, 2  ;;  %s1150_s12 = sand.u32 1, %s1558_s13  }
 0x785   : > { %p1973_p3 = scmp.ne.s32.totalorder %s1955_s24, 0  ;;  %s1151_s30 = scalar_lea.sflag [#allocation4], %s1150_s12 }
 0x787   : > { %p1330_p4 = pnand %p1335_p2, %p1973_p3 }
 0x789   : > { %1553 = dma.done.wait (!%p1330_p4), %s1151_s30, 512  }
 0x78a   : > { %1555 = vsyncadd (!%p1330_p4), %s1151_s30, 4294966784  ;;  %p21_p7 = scmp.ge.s32.totalorder %s1667_s19, 4   ;;  %s1974_s13 = smov %s1562_s14 }
 0x78b   : > { %s1975_s14 = smov %s1566_s15  ;;  %s1976_s15 = smov %s1678_s22 }
 0x78c   : > { %s1977_s16 = smov %s1667_s19  ;;  %23 = sbr.rel (!%p21_p7) target bundleno = 4 (0x4), region = 100 }
 0x793   :  { %1156 = vsyncpa [#allocation3], 1 }
 0x794   :  { %1158 = vsyncpa [#allocation3 + $0x1], 1 }
 0x795   :  { %1159 = vsyncpa [#allocation4], 1 }
 0x796   :  { %1161 = vsyncpa [#allocation4 + $0x1], 1 }

</bundles_post_ra>
